<compile_context>
chip_gen: v5e
topology: v5e:2x2
jax: 0.10.0
libtpu: 0.0.40
codegen_flags: <defaults>
</compile_context>

<pallas_src>
import math

import jax
import jax.numpy as jnp
from jax.experimental import pallas as pl
from jax.experimental.pallas import tpu as pltpu

LANE = 128          # lane width: out-dim padding granularity (lane-dense stores)
SUBLANE_BF16 = 16   # bf16 sublane packing: M / rank padding granularity


def _round_up(x, m):
    return (x + m - 1) // m * m


def _tpu_defaults():
    """Generation-aware tile sizes and VMEM limit."""
    tile_m, tile_n = 256, 256           # v6e / v7x: 256-wide MXU
    vmem_limit = 48 * 1024 * 1024       # safe fallback on v7x's 64 MiB per-TC VMEM
    try:
        kind = jax.devices()[0].device_kind.lower()
    except Exception:
        kind = ""
    if "v5" in kind or "v4" in kind:
        tile_m, tile_n = 512, 128       # 128-wide MXU: win is fewer grid steps / re-reads
    try:
        vmem_limit = min(int(pltpu.get_tpu_info().vmem_capacity_bytes * 3 // 4),
                         96 * 1024 * 1024)
    except Exception:
        pass
    return tile_m, tile_n, vmem_limit


def lora_linear_kernel(x_ref, w_ref, b_ref, wd_ref, wu_ref, o_ref, acc_ref, dacc_ref):
    """One (M-tile, N-tile, K-tile) step of
         out = x @ W_org^T + b + (x @ W_down^T) @ (scale * W_up)^T
    with f32 MXU accumulation. Weights arrive pre-transposed (K-major), the scale is
    already folded into W_up, and K is the innermost grid axis ("arbitrary")."""
    k = pl.program_id(2)

    @pl.when(k == 0)
    def _():
        acc_ref[...] = jnp.zeros_like(acc_ref)
        dacc_ref[...] = jnp.zeros_like(dacc_ref)

    x = x_ref[...]                                                  # (tm, tk) bf16
    acc_ref[...] += jnp.dot(x, w_ref[...], preferred_element_type=jnp.float32)
    dacc_ref[...] += jnp.dot(x, wd_ref[...], preferred_element_type=jnp.float32)

    @pl.when(k == pl.num_programs(2) - 1)
    def _():
        # LoRA up-projection on the accumulated low-rank activations (scale pre-folded).
        u = jnp.dot(dacc_ref[...].astype(wu_ref.dtype), wu_ref[...],
                    preferred_element_type=jnp.float32)
        o_ref[...] = (acc_ref[...] + b_ref[...] + u).astype(o_ref.dtype)


def prepare_lora_weights(w_org, b_org, w_down, w_up, multiplier, alpha,
                         *, dtype=jnp.bfloat16):
    """One-time (outside the hot path) transpose + scale-fold + cast + pad.

    Layouts handed to the kernel (K-major, so contractions are plain (M,K)x(K,N)):
      W_org^T : (in_dim, out_p)   bf16
      bias    : (1, out_p)        f32
      W_down^T: (in_dim, rank_p)  bf16
      W_up^T  : (rank_p, out_p)   bf16, pre-multiplied by multiplier*alpha/rank in f32
    out_p = round_up(out_dim, 128) (lane-dense stores), rank_p = round_up(rank, 16).
    Zero padding contributes nothing to any product."""
    out_dim, in_dim = w_org.shape
    rank = w_down.shape[0]
    scale = float(multiplier) * float(alpha) / float(rank)

    out_p = _round_up(out_dim, LANE)
    rank_p = _round_up(rank, SUBLANE_BF16)

    w_org_t = jnp.zeros((in_dim, out_p), dtype).at[:, :out_dim].set(
        jnp.asarray(w_org, jnp.float32).T.astype(dtype))
    if b_org is None:
        b_p = jnp.zeros((1, out_p), jnp.float32)
    else:
        b_p = jnp.zeros((1, out_p), jnp.float32).at[0, :out_dim].set(
            jnp.asarray(b_org, jnp.float32))
    w_down_t = jnp.zeros((in_dim, rank_p), dtype).at[:, :rank].set(
        jnp.asarray(w_down, jnp.float32).T.astype(dtype))
    w_up_t = jnp.zeros((rank_p, out_p), dtype).at[:rank, :out_dim].set(
        (jnp.asarray(w_up, jnp.float32) * scale).T.astype(dtype))
    return w_org_t, b_p, w_down_t, w_up_t, out_dim


def lora_linear_forward(x, w_org_t, b_p, w_down_t, w_up_t, out_dim,
                        *, tile_m=None, tile_n=None, dtype=jnp.bfloat16):
    """x: [..., in_dim] (bf16 preferred; no cast if it already is). Returns bf16."""
    in_dim = x.shape[-1]
    out_p = w_org_t.shape[1]
    rank_p = w_down_t.shape[1]
    lead = x.shape[:-1]
    M = int(math.prod(lead)) if lead else 1

    tm_d, tn_d, vmem_limit = _tpu_defaults()
    tile_m = tile_m or tm_d
    tile_n = tile_n or tn_d

    # Clamp tiles to the problem; keep everything (16,128)-legal and divisible.
    tile_m = min(tile_m, _round_up(M, SUBLANE_BF16))
    tile_n = min(tile_n, out_p)
    while out_p % tile_n:
        tile_n -= LANE
    M_p = _round_up(M, tile_m)

    # K tiling: full-K blocks for typical LoRA layer widths; 512-wide K tiles for very
    # large in_features so per-step VMEM stays bounded on v7x's 64 MiB per-TC VMEM.
    tile_k = 512 if (in_dim > 2048 and in_dim % 512 == 0) else in_dim

    x2d = x.reshape(M, in_dim).astype(dtype)            # no-op if x is already bf16
    if M_p != M:
        x2d = jnp.pad(x2d, ((0, M_p - M), (0, 0)))      # small sublane pad only

    n_i, n_j, n_k = M_p // tile_m, out_p // tile_n, in_dim // tile_k

    # Grid order: re-stream whichever of {weights, activations} is cheaper to re-read.
    w_bytes = (w_org_t.size + w_down_t.size + w_up_t.size) * w_org_t.dtype.itemsize
    x_bytes = x2d.size * x2d.dtype.itemsize
    m_slow = w_bytes * (n_i - 1) <= x_bytes * (n_j - 1)
    if m_slow:   # M slow axis: x streamed once, weights re-fetched per M tile
        grid = (n_i, n_j, n_k)
        gi = lambda i, j, k: i
        gj = lambda i, j, k: j
        gk = lambda i, j, k: k
    else:        # N slow axis: weights streamed once, x re-fetched per N tile
        grid = (n_j, n_i, n_k)
        gi = lambda j, i, k: i
        gj = lambda j, i, k: j
        gk = lambda j, i, k: k

    out2d = pl.pallas_call(
        lora_linear_kernel,
        out_shape=jax.ShapeDtypeStruct((M_p, out_p), dtype),        # bf16 writeback
        grid_spec=pltpu.PrefetchScalarGridSpec(
            num_scalar_prefetch=0,
            grid=grid,
            in_specs=[
                pl.BlockSpec((tile_m, tile_k), lambda *a: (gi(*a), gk(*a))),  # x
                pl.BlockSpec((tile_k, tile_n), lambda *a: (gk(*a), gj(*a))),  # W_org^T
                pl.BlockSpec((1, tile_n),      lambda *a: (0, gj(*a))),       # bias
                pl.BlockSpec((tile_k, rank_p), lambda *a: (gk(*a), 0)),       # W_down^T
                pl.BlockSpec((rank_p, tile_n), lambda *a: (0, gj(*a))),       # scale*W_up^T
            ],
            out_specs=pl.BlockSpec((tile_m, tile_n), lambda *a: (gi(*a), gj(*a))),
            scratch_shapes=[
                pltpu.VMEM((tile_m, tile_n), jnp.float32),   # main GEMM accumulator
                pltpu.VMEM((tile_m, rank_p), jnp.float32),   # LoRA down-proj accumulator
            ],
        ),
        compiler_params=pltpu.CompilerParams(
            dimension_semantics=("parallel", "parallel", "arbitrary"),
            vmem_limit_bytes=vmem_limit,
        ),
    )(x2d, w_org_t, b_p, w_down_t, w_up_t)

    if M_p != M or out_p != out_dim:
        out2d = out2d[:M, :out_dim]
    return out2d.reshape(*lead, out_dim)


if __name__ == "__main__":
    # shapes implied by the module: Linear(in=32, out=32), rank=4, x=[2, 8, 32]
    B, S, in_dim, out_dim, rank = 2, 8, 32, 32, 4
    multiplier, alpha = 1.0, 1.0

    key = jax.random.PRNGKey(0)
    kx, kw, kb, kd, ku = jax.random.split(key, 5)

    # activations arrive already in bf16 (no wrapper-side cast / pad at these shapes)
    x = jax.random.normal(kx, (B, S, in_dim), dtype=jnp.float32).astype(jnp.bfloat16)

    # org nn.Linear default init: U(-1/sqrt(in), 1/sqrt(in))
    bound = 1.0 / math.sqrt(in_dim)
    w_org = jax.random.uniform(kw, (out_dim, in_dim), minval=-bound, maxval=bound)
    b_org = jax.random.uniform(kb, (out_dim,), minval=-bound, maxval=bound)

    # lora_down: kaiming_uniform_(a=sqrt(5)) -> U(-1/sqrt(in), 1/sqrt(in))
    w_down = jax.random.uniform(kd, (rank, in_dim), minval=-bound, maxval=bound)
    # NOTE: the module zero-inits lora_up; use a small deterministic nonzero init here so
    # the low-rank path is actually exercised by the kernel.
    w_up = 0.01 * jax.random.normal(ku, (out_dim, rank), dtype=jnp.float32)

    # one-time weight prep (transpose + scale-fold + bf16 cast + pad), out of the hot path
    w_org_t, b_p, w_down_t, w_up_t, out_d = prepare_lora_weights(
        w_org, b_org, w_down, w_up, multiplier, alpha)

    out = lora_linear_forward(x, w_org_t, b_p, w_down_t, w_up_t, out_d)
    out = jax.block_until_ready(out)

    # pure-JAX reference with the same quantization chain (bf16 weights/activations,
    # f32 accumulation, bf16 low-rank intermediate, bf16 output)
    scale = multiplier * alpha / rank
    xf = x.astype(jnp.float32).reshape(B * S, in_dim)
    wf = jnp.asarray(w_org, jnp.float32).astype(jnp.bfloat16).astype(jnp.float32)
    wdf = jnp.asarray(w_down, jnp.float32).astype(jnp.bfloat16).astype(jnp.float32)
    wuf = (jnp.asarray(w_up, jnp.float32) * scale).astype(jnp.bfloat16).astype(jnp.float32)
    d_ref = (xf @ wdf.T).astype(jnp.bfloat16).astype(jnp.float32)
    ref = xf @ wf.T + jnp.asarray(b_org, jnp.float32)[None, :] + d_ref @ wuf.T
    ref = ref.astype(jnp.bfloat16).astype(jnp.float32).reshape(B, S, out_dim)

    assert out.shape == (B, S, out_dim)
    assert out.dtype == jnp.bfloat16
    assert jnp.allclose(out.astype(jnp.float32), ref, atol=3e-2, rtol=3e-2), \
        "mismatch vs reference"
    print("KERNEL_OK")
</pallas_src>

<mosaic_0001>
module attributes {stable_mosaic.version = 11 : i64} {
  func.func @lora_linear_kernel(%arg0: i32, %arg1: i32, %arg2: i32, %arg3: memref<16x32xbf16, #tpu.memory_space<vmem>>, %arg4: memref<32x128xbf16, #tpu.memory_space<vmem>>, %arg5: memref<1x128xf32, #tpu.memory_space<vmem>>, %arg6: memref<32x16xbf16, #tpu.memory_space<vmem>>, %arg7: memref<16x128xbf16, #tpu.memory_space<vmem>>, %arg8: memref<16x128xbf16, #tpu.memory_space<vmem>>, %arg9: memref<16x128xf32, #tpu.memory_space<vmem>>, %arg10: memref<16x16xf32, #tpu.memory_space<vmem>>) attributes {dimension_semantics = [#tpu.dimension_semantics<parallel>, #tpu.dimension_semantics<parallel>, #tpu.dimension_semantics<arbitrary>], iteration_bounds = array<i64: 1, 1, 1>, scalar_prefetch = 0 : i64, scratch_operands = 2 : i64, tpu.core_type = #tpu.core_type<tc>, window_params = [{transform_indices = @transform_0, window_bounds = array<i64: 16, 32>}, {transform_indices = @transform_1, window_bounds = array<i64: 32, 128>}, {transform_indices = @transform_2, window_bounds = array<i64: 1, 128>}, {transform_indices = @transform_3, window_bounds = array<i64: 32, 16>}, {transform_indices = @transform_4, window_bounds = array<i64: 16, 128>}, {transform_indices = @transform_5, window_bounds = array<i64: 16, 128>}]} {
    %c0_i32 = arith.constant 0 : i32
    %0 = arith.cmpi eq, %arg2, %c0_i32 : i32
    %1 = arith.extui %0 : i1 to i32
    %c0_i32_0 = arith.constant 0 : i32
    %2 = arith.cmpi ne, %1, %c0_i32_0 : i32
    scf.if %2 {
      %cst_17 = arith.constant 0.000000e+00 : f32
      %17 = vector.broadcast %cst_17 : f32 to vector<16x128xf32>
      %c0_18 = arith.constant 0 : index
      %c0_19 = arith.constant 0 : index
      %18 = vector.load %arg9[%c0_18, %c0_19] : memref<16x128xf32, #tpu.memory_space<vmem>>, vector<16x128xf32>
      tpu.vector_store %arg9[%c0_18, %c0_19], %17 {strides = array<i32>} : memref<16x128xf32, #tpu.memory_space<vmem>>, vector<16x128xf32>,
      %cst_20 = arith.constant 0.000000e+00 : f32
      %19 = vector.broadcast %cst_20 : f32 to vector<16x16xf32>
      %c0_21 = arith.constant 0 : index
      %c0_22 = arith.constant 0 : index
      %20 = vector.load %arg10[%c0_21, %c0_22] : memref<16x16xf32, #tpu.memory_space<vmem>>, vector<16x16xf32>
      tpu.vector_store %arg10[%c0_21, %c0_22], %19 {strides = array<i32>} : memref<16x16xf32, #tpu.memory_space<vmem>>, vector<16x16xf32>,
    } else {
    }
    %c0 = arith.constant 0 : index
    %c0_1 = arith.constant 0 : index
    %3 = vector.load %arg3[%c0, %c0_1] : memref<16x32xbf16, #tpu.memory_space<vmem>>, vector<16x32xbf16>
    %c0_2 = arith.constant 0 : index
    %c0_3 = arith.constant 0 : index
    %4 = vector.load %arg9[%c0_2, %c0_3] : memref<16x128xf32, #tpu.memory_space<vmem>>, vector<16x128xf32>
    %c0_4 = arith.constant 0 : index
    %c0_5 = arith.constant 0 : index
    %5 = vector.load %arg4[%c0_4, %c0_5] : memref<32x128xbf16, #tpu.memory_space<vmem>>, vector<32x128xbf16>
    %cst = arith.constant dense<0.000000e+00> : vector<16x128xf32>
    %6 = tpu.matmul %3, %5, %cst {dimension_numbers = #tpu.dot_dimension_numbers<[1], [0], [0], [1], [0, 0, 1, 1], [], []>} : vector<16x32xbf16>, vector<32x128xbf16>, vector<16x128xf32> -> vector<16x128xf32>
    %7 = arith.addf %4, %6 : vector<16x128xf32>
    %c0_6 = arith.constant 0 : index
    %c0_7 = arith.constant 0 : index
    %8 = vector.load %arg9[%c0_6, %c0_7] : memref<16x128xf32, #tpu.memory_space<vmem>>, vector<16x128xf32>
    tpu.vector_store %arg9[%c0_6, %c0_7], %7 {strides = array<i32>} : memref<16x128xf32, #tpu.memory_space<vmem>>, vector<16x128xf32>,
    %c0_8 = arith.constant 0 : index
    %c0_9 = arith.constant 0 : index
    %9 = vector.load %arg10[%c0_8, %c0_9] : memref<16x16xf32, #tpu.memory_space<vmem>>, vector<16x16xf32>
    %c0_10 = arith.constant 0 : index
    %c0_11 = arith.constant 0 : index
    %10 = vector.load %arg6[%c0_10, %c0_11] : memref<32x16xbf16, #tpu.memory_space<vmem>>, vector<32x16xbf16>
    %cst_12 = arith.constant dense<0.000000e+00> : vector<16x16xf32>
    %11 = tpu.matmul %3, %10, %cst_12 {dimension_numbers = #tpu.dot_dimension_numbers<[1], [0], [0], [1], [0, 0, 1, 1], [], []>} : vector<16x32xbf16>, vector<32x16xbf16>, vector<16x16xf32> -> vector<16x16xf32>
    %12 = arith.addf %9, %11 : vector<16x16xf32>
    %c0_13 = arith.constant 0 : index
    %c0_14 = arith.constant 0 : index
    %13 = vector.load %arg10[%c0_13, %c0_14] : memref<16x16xf32, #tpu.memory_space<vmem>>, vector<16x16xf32>
    tpu.vector_store %arg10[%c0_13, %c0_14], %12 {strides = array<i32>} : memref<16x16xf32, #tpu.memory_space<vmem>>, vector<16x16xf32>,
    %c0_i32_15 = arith.constant 0 : i32
    %14 = arith.cmpi eq, %arg2, %c0_i32_15 : i32
    %15 = arith.extui %14 : i1 to i32
    %c0_i32_16 = arith.constant 0 : i32
    %16 = arith.cmpi ne, %15, %c0_i32_16 : i32
    scf.if %16 {
      %c0_17 = arith.constant 0 : index
      %c0_18 = arith.constant 0 : index
      %17 = vector.load %arg10[%c0_17, %c0_18] : memref<16x16xf32, #tpu.memory_space<vmem>>, vector<16x16xf32>
      %18 = arith.truncf %17 : vector<16x16xf32> to vector<16x16xbf16>
      %c0_19 = arith.constant 0 : index
      %c0_20 = arith.constant 0 : index
      %19 = vector.load %arg7[%c0_19, %c0_20] : memref<16x128xbf16, #tpu.memory_space<vmem>>, vector<16x128xbf16>
      %cst_21 = arith.constant dense<0.000000e+00> : vector<16x128xf32>
      %20 = tpu.matmul %18, %19, %cst_21 {dimension_numbers = #tpu.dot_dimension_numbers<[1], [0], [0], [1], [0, 0, 1, 1], [], []>} : vector<16x16xbf16>, vector<16x128xbf16>, vector<16x128xf32> -> vector<16x128xf32>
      %c0_22 = arith.constant 0 : index
      %c0_23 = arith.constant 0 : index
      %21 = vector.load %arg9[%c0_22, %c0_23] : memref<16x128xf32, #tpu.memory_space<vmem>>, vector<16x128xf32>
      %c0_24 = arith.constant 0 : index
      %c0_25 = arith.constant 0 : index
      %22 = vector.load %arg5[%c0_24, %c0_25] : memref<1x128xf32, #tpu.memory_space<vmem>>, vector<1x128xf32>
      %23 = vector.broadcast %22 : vector<1x128xf32> to vector<16x128xf32>
      %24 = arith.addf %21, %23 : vector<16x128xf32>
      %25 = arith.addf %24, %20 : vector<16x128xf32>
      %26 = arith.truncf %25 : vector<16x128xf32> to vector<16x128xbf16>
      %c0_26 = arith.constant 0 : index
      %c0_27 = arith.constant 0 : index
      %27 = vector.load %arg8[%c0_26, %c0_27] : memref<16x128xbf16, #tpu.memory_space<vmem>>, vector<16x128xbf16>
      tpu.vector_store %arg8[%c0_26, %c0_27], %26 {strides = array<i32>} : memref<16x128xbf16, #tpu.memory_space<vmem>>, vector<16x128xbf16>,
    } else {
    }
    return
  }
  func.func @transform_0(%arg0: i32, %arg1: i32, %arg2: i32) -> (i32, i32) {
    %c0_i32 = arith.constant 0 : i32
    return %arg0, %arg2 : i32, i32
  }
  func.func @transform_1(%arg0: i32, %arg1: i32, %arg2: i32) -> (i32, i32) {
    %c0_i32 = arith.constant 0 : i32
    return %arg2, %arg1 : i32, i32
  }
  func.func @transform_2(%arg0: i32, %arg1: i32, %arg2: i32) -> (i32, i32) {
    %c0_i32 = arith.constant 0 : i32
    %c0_i32_0 = arith.constant 0 : i32
    return %c0_i32, %arg1 : i32, i32
  }
  func.func @transform_3(%arg0: i32, %arg1: i32, %arg2: i32) -> (i32, i32) {
    %c0_i32 = arith.constant 0 : i32
    %c0_i32_0 = arith.constant 0 : i32
    return %arg2, %c0_i32 : i32, i32
  }
  func.func @transform_4(%arg0: i32, %arg1: i32, %arg2: i32) -> (i32, i32) {
    %c0_i32 = arith.constant 0 : i32
    %c0_i32_0 = arith.constant 0 : i32
    return %c0_i32, %arg1 : i32, i32
  }
  func.func @transform_5(%arg0: i32, %arg1: i32, %arg2: i32) -> (i32, i32) {
    %c0_i32 = arith.constant 0 : i32
    return %arg0, %arg1 : i32, i32
  }
}

</mosaic_0001>

<bundles_post_ra>
// kernel: tpu_custom_call.1
= control target key start
LH: loop header
LB: loop body
LE: loop exit
PB: predicated region body
PF: predicated region fallthrough
CT: control target
= control target key end

     0   :  { %10 = vsyncpa [#allocation5], 0  ;;  %s361_s0 = inlined_call_operand.vmem [shape: bf16[16,32], index: 0, kind: input, shape index: {}]   ;;  %s362_s1 = inlined_call_operand.vmem [shape: bf16[32,128], index: 1, kind: input, shape index: {}]   ;;  %s363_s2 = inlined_call_operand.vmem [shape: f32[1,128], index: 2, kind: input, shape index: {}]   ;;  %s364_s3 = inlined_call_operand.vmem [shape: bf16[32,16], index: 3, kind: input, shape index: {}]   ;;  %s365_s4 = inlined_call_operand.hbm [shape: bf16[16,128], index: 4, kind: input, shape index: {}]   ;;  %s366_s5 = inlined_call_operand.hbm [shape: bf16[16,128], index: 5, kind: output, shape index: {}]  }
   0x1   :  { %11 = vsyncpa [#allocation6], 0  ;;  %s24_s20 = sshll.u32 %s365_s4, 4  ;;  %s291_s21 = smov [#allocation4]   ;;  %s25_s20 = int_to_ptr.hbm [resolvable:$true] %s24_s20 }
   0x2   :  { %s26_s22 = sshll.u32 %s291_s21, 4  ;;  %s292_s23 = smov 64   ;;  %s27_s22 = int_to_ptr.vmem [resolvable:$true] %s26_s22 }
   0x3   :  { %s293_s24 = smov 4  }
   0x4   :  { %32 = dma.hbm_to_vmem [thread:$0]  %s25_s20, 128, %s27_s22, [#allocation5], %s292_s23, %s292_s23, %s293_s24  }
   0x5   :  { %287 = dma.done.wait [#allocation5], 128  }
   0x6   :  { %288 = vsyncadd [#allocation5], 4294967168  ;;  %vm44_vm0 = vcmask 130048   ;;  %v294_v0 = vmov 0.0   ;;  %v226_v1 = vld [vmem:[%s364_s3 + $0x8] sm:$0xff]  ;;  %v225_v2 = vld [vmem:[%s364_s3] sm:$0xff] }
   0x7   :  { %45 = vst.msk [vmem:[#allocation3] sm:$0xff] %vm44_vm0, %v294_v0  ;;  %118 = vmatpush.bf16.msra.mxu1 %v226_v1  ;;  %v222_v3 = vld [vmem:[%s361_s0] sm:$0xff]  ;;  %vm72_vm1 = vcmask 261120   ;;  %v224_v4 = vld [vmem:[%s362_s1 + $0x8] sm:$0xff]  ;;  %v227_v6 = vld [vmem:[#allocation4] sm:$0xff]  ;;  %s295_s3 = smov [#allocation7]  }
   0x8   :  { %46 = vst.msk [vmem:[#allocation3 + $0x8] sm:$0xff] %vm44_vm0, %v294_v0  ;;  %82 = vmatpush.bf16.msra.mxu0 %v224_v4  ;;  %v223_v5 = vld [vmem:[%s362_s1] sm:$0xff]  ;;  %155 = vmatpush.bf16.msra.mxu2 %v227_v6  ;;  %s180_s9 = sshll.u32 %s295_s3, 4  ;;  %s182_s12 = sshll.u32 %s366_s5, 4  ;;  %s181_s9 = int_to_ptr.vmem [resolvable:$true] %s180_s9  ;;  %s183_s12 = int_to_ptr.hbm [resolvable:$true] %s182_s12 }
   0x9   :  { %v238_v18 = vld [vmem:[%s363_s2] ss:$0 sm:$0xff] }
   0xb   :  { %119 = vmatpush.bf16.msra.mxu1 %v225_v2 }
   0xc   :  { %83 = vmatpush.bf16.msra.mxu0 %v223_v5 }
   0xe   :  { %216 = vmatmul.msk.bf16.vlgmr.msra.gmra.mxu1 %vm72_vm1, %v222_v3  ;;  %v94_v7 = vld [vmem:[#allocation3] sm:$0xff] }
   0xf   :  { %207 = vmatmul.msk.bf16.vlgmr.msra.gmra.mxu0 %vm72_vm1, %v222_v3  ;;  %v95_v10 = vld [vmem:[#allocation3 + $0x8] sm:$0xff] }
  0x8b   :  { %v121_v8 = vpop.f32.mrf.mxu1 }
  0x8c   :  { %v126_v9 = vadd.f32 %v121_v8, %v94_v7  ;;  %v85_v16 = vpop.f32.mrf.mxu0 }
  0x8d   :  { %v168_v20 = vadd.f32 %v238_v18, %v85_v16 }
  0x8e   :  { %129 = vst.msk [vmem:[#allocation3] sm:$0xff] %vm44_vm0, %v126_v9 }
  0x93   :  { %v123_v11 = vpop.f32.mrf.mxu1 }
  0x94   :  { %v127_v12 = vadd.f32 %v123_v11, %v95_v10  ;;  %v87_v19 = vpop.f32.mrf.mxu0 }
  0x95   :  { %v134_v13 = vld [vmem:[#allocation3] sm:$0xff]  ;;  %v169_v21 = vadd.f32 %v238_v18, %v87_v19 }
  0x96   :  { %130 = vst.msk [vmem:[#allocation3 + $0x8] sm:$0xff] %vm44_vm0, %v127_v12 }
  0x9d   :  { %v135_v14 = vld [vmem:[#allocation3 + $0x8] sm:$0xff] }
  0x9e   :  { %v136_v15 = vpack.c.bf16 %v135_v14, %v134_v13 }
  0xa0   :  { %221 = vmatmul.msk.bf16.vlgmr.msra.gmra.mxu2 %vm44_vm0, %v136_v15 }
 0x123   :  { %v157_v17 = vpop.f32.mrf.mxu2 }
 0x124   :  { %v170_v23 = vadd.f32 %v168_v20, %v157_v17 }
 0x12b   :  { %v159_v22 = vpop.f32.mrf.mxu2 }
 0x12c   :  { %v171_v24 = vadd.f32 %v169_v21, %v159_v22 }
 0x12e   :  { %v231_v25 = vpack.c.bf16 %v171_v24, %v170_v23 }
 0x130   :  { %232 = vst [vmem:[#allocation7] sm:$0xff] %v231_v25  }
 0x131   :  { %188 = dma.vmem_to_hbm [thread:$0]  %s181_s9, 128, %s183_s12, [#allocation6], %s292_s23, %s292_s23, %s293_s24  }
 0x132   :  { %289 = dma.done.wait [#allocation6], 128  }
 0x133   :  { %290 = vsyncadd [#allocation6], 4294967168 }
 0x134   :  { %193 = vsyncpa [#allocation5], 1 }
 0x135   :  { %194 = vsyncpa [#allocation6], 1 }

</bundles_post_ra>
